<compile_context>
chip_gen: v6e
topology: v6e:2x2x1
jax: 0.10.0
libtpu: 0.0.40
codegen_flags: <defaults>
</compile_context>

<pallas_src>
import math
import functools

import jax
import jax.numpy as jnp
from jax import lax
from jax.experimental import pallas as pl
from jax.experimental.pallas import tpu as pltpu


def _two_stream_attn_kernel(x_ref, q_ref, wkv_ref, bkv_ref, wo_ref, bo_ref,
                            o_ref,
                            *, num_heads: int, head_dim: int,
                            seq_len: int, batch_block: int):
    E = num_heads * head_dim
    compute_dtype = x_ref.dtype          # bf16 (default) or f32

    # Fused K/V projection over all TB*S rows in this block (single MXU pass).
    x2 = x_ref[...].reshape(batch_block * seq_len, E)                 # (TB*S, E)
    kv = jnp.dot(x2, wkv_ref[...],
                 preferred_element_type=jnp.float32) + bkv_ref[...]   # (TB*S, 2E) f32
    kv = kv.astype(compute_dtype)

    q = q_ref[...]            # (L, E), pre-projected and pre-scaled, compute dtype
    wo = wo_ref[...]          # (E, E), compute dtype
    bo = bo_ref[...]          # (1, E), f32
    L = q.shape[0]

    for b in range(batch_block):
        row0 = b * seq_len
        k_b = kv[row0:row0 + seq_len, :E]        # (S, E)
        v_b = kv[row0:row0 + seq_len, E:]        # (S, E)

        # Per-head attention, accumulated directly into the output projection
        # (no concatenate, no explicit K transpose).
        acc = jnp.zeros((L, E), jnp.float32)
        for h in range(num_heads):
            lo = h * head_dim
            hi = lo + head_dim
            qh = q[:, lo:hi]                     # (L, Dh)
            kh = k_b[:, lo:hi]                   # (S, Dh)
            vh = v_b[:, lo:hi]                   # (S, Dh)

            # scores (L, S): contract the head dim of both operands.
            s = lax.dot_general(qh, kh, (((1,), (1,)), ((), ())),
                                preferred_element_type=jnp.float32)
            # Numerically stable softmax over keys, kept in f32.
            s = s - jnp.max(s, axis=-1, keepdims=True)
            p = jnp.exp(s)
            p = p * pl.reciprocal(jnp.sum(p, axis=-1, keepdims=True), approx=True)

            ctx = jnp.dot(p.astype(compute_dtype), vh,
                          preferred_element_type=jnp.float32)          # (L, Dh)
            acc = acc + jnp.dot(ctx.astype(compute_dtype), wo[lo:hi, :],
                                preferred_element_type=jnp.float32)    # (L, E)

        o_ref[b] = (acc + bo).astype(o_ref.dtype)


def _choose_batch_block(B, S, E, itemsize, *, target_rows=512,
                        vmem_budget_bytes=8 * 1024 * 1024):
    """Largest divisor of B whose x/out tiles stay in budget, aiming for
    >= target_rows rows per K/V projection matmul."""
    best = 1
    for tb in range(1, B + 1):
        if B % tb:
            continue
        # x tile (double-buffered) + f32 output tile (double-buffered), rough.
        tile_bytes = 2 * tb * S * E * itemsize + 2 * tb * S * E * 4
        if tile_bytes > vmem_budget_bytes:
            break
        best = tb
        if tb * S >= target_rows:
            break
    return best


def two_stream_attention(x, latent_queries,
                         wq, bq, wk, bk, wv, bv, wo, bo,
                         *, num_heads: int,
                         compute_dtype=jnp.bfloat16,
                         batch_block=None,
                         out_dtype=None):
    """x: (B, S, E); latent_queries: (L, E); weights already (in, out)."""
    B, S, E = x.shape
    L = latent_queries.shape[0]
    assert E % num_heads == 0
    head_dim = E // num_heads
    out_dtype = out_dtype or x.dtype

    # Hoisted, batch-invariant latent-query projection with the score scale
    # folded in (computed once, outside the kernel, in f32).
    scale = 1.0 / math.sqrt(head_dim)
    q = (jnp.dot(latent_queries, wq, preferred_element_type=jnp.float32)
         + bq) * scale
    q = q.astype(compute_dtype)                                    # (L, E)

    # Fused K/V projection weights / biases.
    wkv = jnp.concatenate([wk, wv], axis=1).astype(compute_dtype)  # (E, 2E)
    bkv = jnp.concatenate([bk, bv]).reshape(1, 2 * E).astype(jnp.float32)
    wo_c = wo.astype(compute_dtype)                                # (E, E)
    bo2 = bo.reshape(1, E).astype(jnp.float32)
    x_c = x.astype(compute_dtype)

    if batch_block is None:
        batch_block = _choose_batch_block(
            B, S, E, jnp.dtype(compute_dtype).itemsize)
    assert B % batch_block == 0, "batch_block must divide batch size"
    grid = (B // batch_block,)

    kernel = functools.partial(
        _two_stream_attn_kernel,
        num_heads=num_heads, head_dim=head_dim,
        seq_len=S, batch_block=batch_block)

    const2d = lambda shape: pl.BlockSpec(shape, lambda b: (0, 0))

    return pl.pallas_call(
        kernel,
        out_shape=jax.ShapeDtypeStruct((B, L, E), out_dtype),
        grid_spec=pltpu.PrefetchScalarGridSpec(
            num_scalar_prefetch=0,
            grid=grid,
            in_specs=[
                pl.BlockSpec((batch_block, S, E), lambda b: (b, 0, 0)),  # x
                const2d((L, E)),        # pre-projected, pre-scaled q
                const2d((E, 2 * E)),    # fused Wkv
                const2d((1, 2 * E)),    # fused bkv (f32)
                const2d((E, E)),        # Wo
                const2d((1, E)),        # bo (f32)
            ],
            out_specs=pl.BlockSpec((batch_block, L, E), lambda b: (b, 0, 0)),
        ),
        compiler_params=pltpu.CompilerParams(
            dimension_semantics=("parallel",),
            vmem_limit_bytes=32 * 1024 * 1024,
        ),
    )(x_c, q, wkv, bkv, wo_c, bo2)


def _reference(x, latent_queries, wq, bq, wk, bk, wv, bv, wo, bo, *, num_heads):
    """Pure-JAX f32 reference reproducing the PyTorch forward."""
    B, S, E = x.shape
    L = latent_queries.shape[0]
    Dh = E // num_heads

    def split_heads(t):  # (B, N, E) -> (B, H, N, Dh)
        return t.reshape(t.shape[0], t.shape[1], num_heads, Dh).transpose(0, 2, 1, 3)

    lq = jnp.broadcast_to(latent_queries[None], (B, L, E))
    q = split_heads(lq @ wq + bq)
    k = split_heads(x @ wk + bk)
    v = split_heads(x @ wv + bv)
    scores = jnp.einsum("bhld,bhsd->bhls", q, k) / math.sqrt(Dh)
    attn = jax.nn.softmax(scores, axis=-1)
    out = jnp.einsum("bhls,bhsd->bhld", attn, v)
    out = out.transpose(0, 2, 1, 3).reshape(B, L, E)
    return out @ wo + bo


if __name__ == "__main__":
    # Small shapes consistent with the module.
    B, S = 2, 16
    embedding_dim = 32
    num_heads = 4
    latent_dim = 8

    key = jax.random.PRNGKey(0)
    keys = jax.random.split(key, 12)

    # Deterministic synthetic parameters (module __init__ shapes).
    latent_queries = jax.random.normal(keys[0], (latent_dim, embedding_dim), jnp.float32)
    # nn.Linear weights are (out, in); store pre-transposed as (in, out).
    scale = 1.0 / math.sqrt(embedding_dim)
    wq = jax.random.uniform(keys[1], (embedding_dim, embedding_dim), jnp.float32, -scale, scale)
    bq = jax.random.uniform(keys[2], (embedding_dim,), jnp.float32, -scale, scale)
    wk = jax.random.uniform(keys[3], (embedding_dim, embedding_dim), jnp.float32, -scale, scale)
    bk = jax.random.uniform(keys[4], (embedding_dim,), jnp.float32, -scale, scale)
    wv = jax.random.uniform(keys[5], (embedding_dim, embedding_dim), jnp.float32, -scale, scale)
    bv = jax.random.uniform(keys[6], (embedding_dim,), jnp.float32, -scale, scale)
    wo = jax.random.uniform(keys[7], (embedding_dim, embedding_dim), jnp.float32, -scale, scale)
    bo = jax.random.uniform(keys[8], (embedding_dim,), jnp.float32, -scale, scale)

    x = jax.random.normal(keys[9], (B, S, embedding_dim), jnp.float32)

    # TODO(synk): optional additive attention mask path not implemented (mask=None case only).
    ref = _reference(x, latent_queries, wq, bq, wk, bk, wv, bv, wo, bo,
                     num_heads=num_heads)

    # f32 compute path (tight check of kernel logic).
    out_f32 = two_stream_attention(x, latent_queries,
                                   wq, bq, wk, bk, wv, bv, wo, bo,
                                   num_heads=num_heads,
                                   compute_dtype=jnp.float32)
    out_f32 = jax.block_until_ready(out_f32)
    assert out_f32.shape == (B, latent_dim, embedding_dim)
    assert jnp.allclose(out_f32, ref, atol=2e-3, rtol=2e-3), "f32 mismatch vs reference"

    # bf16 compute path (default; f32 accumulation + f32 softmax).
    out_bf16 = two_stream_attention(x, latent_queries,
                                    wq, bq, wk, bk, wv, bv, wo, bo,
                                    num_heads=num_heads,
                                    compute_dtype=jnp.bfloat16)
    out_bf16 = jax.block_until_ready(out_bf16)
    assert out_bf16.shape == (B, latent_dim, embedding_dim)
    assert jnp.allclose(out_bf16.astype(jnp.float32), ref, atol=5e-2, rtol=5e-2), \
        "bf16 mismatch vs reference"

    print("KERNEL_OK")
</pallas_src>

<mosaic_0001>
module attributes {stable_mosaic.version = 11 : i64} {
  func.func @_two_stream_attn_kernel(%arg0: i32, %arg1: memref<2x16x32xf32, #tpu.memory_space<vmem>>, %arg2: memref<8x32xf32, #tpu.memory_space<vmem>>, %arg3: memref<32x64xf32, #tpu.memory_space<vmem>>, %arg4: memref<1x64xf32, #tpu.memory_space<vmem>>, %arg5: memref<32x32xf32, #tpu.memory_space<vmem>>, %arg6: memref<1x32xf32, #tpu.memory_space<vmem>>, %arg7: memref<2x8x32xf32, #tpu.memory_space<vmem>>) attributes {dimension_semantics = [#tpu.dimension_semantics<parallel>], iteration_bounds = array<i64: 1>, scalar_prefetch = 0 : i64, scratch_operands = 0 : i64, tpu.core_type = #tpu.core_type<tc>, window_params = [{transform_indices = @transform_0, window_bounds = array<i64: 2, 16, 32>}, {pipeline_mode = #tpu.pipeline_mode<synchronous>, transform_indices = @transform_1, window_bounds = array<i64: 8, 32>}, {pipeline_mode = #tpu.pipeline_mode<synchronous>, transform_indices = @transform_2, window_bounds = array<i64: 32, 64>}, {pipeline_mode = #tpu.pipeline_mode<synchronous>, transform_indices = @transform_3, window_bounds = array<i64: 1, 64>}, {pipeline_mode = #tpu.pipeline_mode<synchronous>, transform_indices = @transform_4, window_bounds = array<i64: 32, 32>}, {pipeline_mode = #tpu.pipeline_mode<synchronous>, transform_indices = @transform_5, window_bounds = array<i64: 1, 32>}, {transform_indices = @transform_6, window_bounds = array<i64: 2, 8, 32>}]} {
    %c0 = arith.constant 0 : index
    %c0_0 = arith.constant 0 : index
    %c0_1 = arith.constant 0 : index
    %0 = vector.load %arg1[%c0, %c0_0, %c0_1] : memref<2x16x32xf32, #tpu.memory_space<vmem>>, vector<2x16x32xf32>
    %1 = vector.shape_cast %0 : vector<2x16x32xf32> to vector<32x32xf32>
    %c0_2 = arith.constant 0 : index
    %c0_3 = arith.constant 0 : index
    %2 = vector.load %arg3[%c0_2, %c0_3] : memref<32x64xf32, #tpu.memory_space<vmem>>, vector<32x64xf32>
    %cst = arith.constant dense<0.000000e+00> : vector<32x64xf32>
    %3 = tpu.matmul %1, %2, %cst {dimension_numbers = #tpu.dot_dimension_numbers<[1], [0], [0], [1], [0, 0, 1, 1], [], []>} : vector<32x32xf32>, vector<32x64xf32>, vector<32x64xf32> -> vector<32x64xf32>
    %c0_4 = arith.constant 0 : index
    %c0_5 = arith.constant 0 : index
    %4 = vector.load %arg4[%c0_4, %c0_5] : memref<1x64xf32, #tpu.memory_space<vmem>>, vector<1x64xf32>
    %5 = vector.broadcast %4 : vector<1x64xf32> to vector<32x64xf32>
    %6 = arith.addf %3, %5 : vector<32x64xf32>
    %c0_6 = arith.constant 0 : index
    %c0_7 = arith.constant 0 : index
    %7 = vector.load %arg2[%c0_6, %c0_7] : memref<8x32xf32, #tpu.memory_space<vmem>>, vector<8x32xf32>
    %c0_8 = arith.constant 0 : index
    %c0_9 = arith.constant 0 : index
    %8 = vector.load %arg5[%c0_8, %c0_9] : memref<32x32xf32, #tpu.memory_space<vmem>>, vector<32x32xf32>
    %c0_10 = arith.constant 0 : index
    %c0_11 = arith.constant 0 : index
    %9 = vector.load %arg6[%c0_10, %c0_11] : memref<1x32xf32, #tpu.memory_space<vmem>>, vector<1x32xf32>
    %10 = vector.extract_strided_slice %6 {offsets = [0, 0], sizes = [16, 32], strides = [1, 1]} : vector<32x64xf32> to vector<16x32xf32>
    %11 = vector.extract_strided_slice %6 {offsets = [0, 32], sizes = [16, 32], strides = [1, 1]} : vector<32x64xf32> to vector<16x32xf32>
    %cst_12 = arith.constant 0.000000e+00 : f32
    %12 = vector.broadcast %cst_12 : f32 to vector<8x32xf32>
    %13 = vector.extract_strided_slice %7 {offsets = [0, 0], sizes = [8, 8], strides = [1, 1]} : vector<8x32xf32> to vector<8x8xf32>
    %14 = vector.extract_strided_slice %10 {offsets = [0, 0], sizes = [16, 8], strides = [1, 1]} : vector<16x32xf32> to vector<16x8xf32>
    %15 = vector.extract_strided_slice %11 {offsets = [0, 0], sizes = [16, 8], strides = [1, 1]} : vector<16x32xf32> to vector<16x8xf32>
    %cst_13 = arith.constant dense<0.000000e+00> : vector<8x16xf32>
    %16 = tpu.matmul %13, %14, %cst_13 {dimension_numbers = #tpu.dot_dimension_numbers<[1], [1], [0], [0], [0, 0, 1, 0], [], []>} : vector<8x8xf32>, vector<16x8xf32>, vector<8x16xf32> -> vector<8x16xf32>
    %cst_14 = arith.constant dense<0xFF800000> : vector<8xf32>
    %17 = vector.multi_reduction <maximumf>, %16, %cst_14 [1] : vector<8x16xf32> to vector<8xf32>
    %18 = vector.shape_cast %17 : vector<8xf32> to vector<8x1xf32>
    %19 = vector.broadcast %18 : vector<8x1xf32> to vector<8x16xf32>
    %20 = arith.subf %16, %19 : vector<8x16xf32>
    %21 = math.exp %20 : vector<8x16xf32>
    %cst_15 = arith.constant dense<0.000000e+00> : vector<8xf32>
    %22 = vector.multi_reduction <add>, %21, %cst_15 [1] : vector<8x16xf32> to vector<8xf32>
    %23 = vector.shape_cast %22 : vector<8xf32> to vector<8x1xf32>
    %24 = tpu.reciprocal %23 {approx = true} : vector<8x1xf32> -> vector<8x1xf32>
    %25 = vector.broadcast %24 : vector<8x1xf32> to vector<8x16xf32>
    %26 = arith.mulf %21, %25 : vector<8x16xf32>
    %cst_16 = arith.constant dense<0.000000e+00> : vector<8x8xf32>
    %27 = tpu.matmul %26, %15, %cst_16 {dimension_numbers = #tpu.dot_dimension_numbers<[1], [0], [0], [1], [0, 0, 1, 1], [], []>} : vector<8x16xf32>, vector<16x8xf32>, vector<8x8xf32> -> vector<8x8xf32>
    %28 = vector.extract_strided_slice %8 {offsets = [0, 0], sizes = [8, 32], strides = [1, 1]} : vector<32x32xf32> to vector<8x32xf32>
    %cst_17 = arith.constant dense<0.000000e+00> : vector<8x32xf32>
    %29 = tpu.matmul %27, %28, %cst_17 {dimension_numbers = #tpu.dot_dimension_numbers<[1], [0], [0], [1], [0, 0, 1, 1], [], []>} : vector<8x8xf32>, vector<8x32xf32>, vector<8x32xf32> -> vector<8x32xf32>
    %30 = arith.addf %12, %29 : vector<8x32xf32>
    %31 = vector.extract_strided_slice %7 {offsets = [0, 8], sizes = [8, 8], strides = [1, 1]} : vector<8x32xf32> to vector<8x8xf32>
    %32 = vector.extract_strided_slice %10 {offsets = [0, 8], sizes = [16, 8], strides = [1, 1]} : vector<16x32xf32> to vector<16x8xf32>
    %33 = vector.extract_strided_slice %11 {offsets = [0, 8], sizes = [16, 8], strides = [1, 1]} : vector<16x32xf32> to vector<16x8xf32>
    %cst_18 = arith.constant dense<0.000000e+00> : vector<8x16xf32>
    %34 = tpu.matmul %31, %32, %cst_18 {dimension_numbers = #tpu.dot_dimension_numbers<[1], [1], [0], [0], [0, 0, 1, 0], [], []>} : vector<8x8xf32>, vector<16x8xf32>, vector<8x16xf32> -> vector<8x16xf32>
    %cst_19 = arith.constant dense<0xFF800000> : vector<8xf32>
    %35 = vector.multi_reduction <maximumf>, %34, %cst_19 [1] : vector<8x16xf32> to vector<8xf32>
    %36 = vector.shape_cast %35 : vector<8xf32> to vector<8x1xf32>
    %37 = vector.broadcast %36 : vector<8x1xf32> to vector<8x16xf32>
    %38 = arith.subf %34, %37 : vector<8x16xf32>
    %39 = math.exp %38 : vector<8x16xf32>
    %cst_20 = arith.constant dense<0.000000e+00> : vector<8xf32>
    %40 = vector.multi_reduction <add>, %39, %cst_20 [1] : vector<8x16xf32> to vector<8xf32>
    %41 = vector.shape_cast %40 : vector<8xf32> to vector<8x1xf32>
    %42 = tpu.reciprocal %41 {approx = true} : vector<8x1xf32> -> vector<8x1xf32>
    %43 = vector.broadcast %42 : vector<8x1xf32> to vector<8x16xf32>
    %44 = arith.mulf %39, %43 : vector<8x16xf32>
    %cst_21 = arith.constant dense<0.000000e+00> : vector<8x8xf32>
    %45 = tpu.matmul %44, %33, %cst_21 {dimension_numbers = #tpu.dot_dimension_numbers<[1], [0], [0], [1], [0, 0, 1, 1], [], []>} : vector<8x16xf32>, vector<16x8xf32>, vector<8x8xf32> -> vector<8x8xf32>
    %46 = vector.extract_strided_slice %8 {offsets = [8, 0], sizes = [8, 32], strides = [1, 1]} : vector<32x32xf32> to vector<8x32xf32>
    %cst_22 = arith.constant dense<0.000000e+00> : vector<8x32xf32>
    %47 = tpu.matmul %45, %46, %cst_22 {dimension_numbers = #tpu.dot_dimension_numbers<[1], [0], [0], [1], [0, 0, 1, 1], [], []>} : vector<8x8xf32>, vector<8x32xf32>, vector<8x32xf32> -> vector<8x32xf32>
    %48 = arith.addf %30, %47 : vector<8x32xf32>
    %49 = vector.extract_strided_slice %7 {offsets = [0, 16], sizes = [8, 8], strides = [1, 1]} : vector<8x32xf32> to vector<8x8xf32>
    %50 = vector.extract_strided_slice %10 {offsets = [0, 16], sizes = [16, 8], strides = [1, 1]} : vector<16x32xf32> to vector<16x8xf32>
    %51 = vector.extract_strided_slice %11 {offsets = [0, 16], sizes = [16, 8], strides = [1, 1]} : vector<16x32xf32> to vector<16x8xf32>
    %cst_23 = arith.constant dense<0.000000e+00> : vector<8x16xf32>
    %52 = tpu.matmul %49, %50, %cst_23 {dimension_numbers = #tpu.dot_dimension_numbers<[1], [1], [0], [0], [0, 0, 1, 0], [], []>} : vector<8x8xf32>, vector<16x8xf32>, vector<8x16xf32> -> vector<8x16xf32>
    %cst_24 = arith.constant dense<0xFF800000> : vector<8xf32>
    %53 = vector.multi_reduction <maximumf>, %52, %cst_24 [1] : vector<8x16xf32> to vector<8xf32>
    %54 = vector.shape_cast %53 : vector<8xf32> to vector<8x1xf32>
    %55 = vector.broadcast %54 : vector<8x1xf32> to vector<8x16xf32>
    %56 = arith.subf %52, %55 : vector<8x16xf32>
    %57 = math.exp %56 : vector<8x16xf32>
    %cst_25 = arith.constant dense<0.000000e+00> : vector<8xf32>
    %58 = vector.multi_reduction <add>, %57, %cst_25 [1] : vector<8x16xf32> to vector<8xf32>
    %59 = vector.shape_cast %58 : vector<8xf32> to vector<8x1xf32>
    %60 = tpu.reciprocal %59 {approx = true} : vector<8x1xf32> -> vector<8x1xf32>
    %61 = vector.broadcast %60 : vector<8x1xf32> to vector<8x16xf32>
    %62 = arith.mulf %57, %61 : vector<8x16xf32>
    %cst_26 = arith.constant dense<0.000000e+00> : vector<8x8xf32>
    %63 = tpu.matmul %62, %51, %cst_26 {dimension_numbers = #tpu.dot_dimension_numbers<[1], [0], [0], [1], [0, 0, 1, 1], [], []>} : vector<8x16xf32>, vector<16x8xf32>, vector<8x8xf32> -> vector<8x8xf32>
    %64 = vector.extract_strided_slice %8 {offsets = [16, 0], sizes = [8, 32], strides = [1, 1]} : vector<32x32xf32> to vector<8x32xf32>
    %cst_27 = arith.constant dense<0.000000e+00> : vector<8x32xf32>
    %65 = tpu.matmul %63, %64, %cst_27 {dimension_numbers = #tpu.dot_dimension_numbers<[1], [0], [0], [1], [0, 0, 1, 1], [], []>} : vector<8x8xf32>, vector<8x32xf32>, vector<8x32xf32> -> vector<8x32xf32>
    %66 = arith.addf %48, %65 : vector<8x32xf32>
    %67 = vector.extract_strided_slice %7 {offsets = [0, 24], sizes = [8, 8], strides = [1, 1]} : vector<8x32xf32> to vector<8x8xf32>
    %68 = vector.extract_strided_slice %10 {offsets = [0, 24], sizes = [16, 8], strides = [1, 1]} : vector<16x32xf32> to vector<16x8xf32>
    %69 = vector.extract_strided_slice %11 {offsets = [0, 24], sizes = [16, 8], strides = [1, 1]} : vector<16x32xf32> to vector<16x8xf32>
    %cst_28 = arith.constant dense<0.000000e+00> : vector<8x16xf32>
    %70 = tpu.matmul %67, %68, %cst_28 {dimension_numbers = #tpu.dot_dimension_numbers<[1], [1], [0], [0], [0, 0, 1, 0], [], []>} : vector<8x8xf32>, vector<16x8xf32>, vector<8x16xf32> -> vector<8x16xf32>
    %cst_29 = arith.constant dense<0xFF800000> : vector<8xf32>
    %71 = vector.multi_reduction <maximumf>, %70, %cst_29 [1] : vector<8x16xf32> to vector<8xf32>
    %72 = vector.shape_cast %71 : vector<8xf32> to vector<8x1xf32>
    %73 = vector.broadcast %72 : vector<8x1xf32> to vector<8x16xf32>
    %74 = arith.subf %70, %73 : vector<8x16xf32>
    %75 = math.exp %74 : vector<8x16xf32>
    %cst_30 = arith.constant dense<0.000000e+00> : vector<8xf32>
    %76 = vector.multi_reduction <add>, %75, %cst_30 [1] : vector<8x16xf32> to vector<8xf32>
    %77 = vector.shape_cast %76 : vector<8xf32> to vector<8x1xf32>
    %78 = tpu.reciprocal %77 {approx = true} : vector<8x1xf32> -> vector<8x1xf32>
    %79 = vector.broadcast %78 : vector<8x1xf32> to vector<8x16xf32>
    %80 = arith.mulf %75, %79 : vector<8x16xf32>
    %cst_31 = arith.constant dense<0.000000e+00> : vector<8x8xf32>
    %81 = tpu.matmul %80, %69, %cst_31 {dimension_numbers = #tpu.dot_dimension_numbers<[1], [0], [0], [1], [0, 0, 1, 1], [], []>} : vector<8x16xf32>, vector<16x8xf32>, vector<8x8xf32> -> vector<8x8xf32>
    %82 = vector.extract_strided_slice %8 {offsets = [24, 0], sizes = [8, 32], strides = [1, 1]} : vector<32x32xf32> to vector<8x32xf32>
    %cst_32 = arith.constant dense<0.000000e+00> : vector<8x32xf32>
    %83 = tpu.matmul %81, %82, %cst_32 {dimension_numbers = #tpu.dot_dimension_numbers<[1], [0], [0], [1], [0, 0, 1, 1], [], []>} : vector<8x8xf32>, vector<8x32xf32>, vector<8x32xf32> -> vector<8x32xf32>
    %84 = arith.addf %66, %83 : vector<8x32xf32>
    %85 = vector.broadcast %9 : vector<1x32xf32> to vector<8x32xf32>
    %86 = arith.addf %84, %85 : vector<8x32xf32>
    %c0_33 = arith.constant 0 : index
    %c0_34 = arith.constant 0 : index
    %c0_35 = arith.constant 0 : index
    %87 = vector.load %arg7[%c0_33, %c0_34, %c0_35] : memref<2x8x32xf32, #tpu.memory_space<vmem>>, vector<1x8x32xf32>
    %88 = vector.shape_cast %87 : vector<1x8x32xf32> to vector<8x32xf32>
    %89 = vector.shape_cast %86 : vector<8x32xf32> to vector<1x8x32xf32>
    tpu.vector_store %arg7[%c0_33, %c0_34, %c0_35], %89 {strides = array<i32>} : memref<2x8x32xf32, #tpu.memory_space<vmem>>, vector<1x8x32xf32>,
    %90 = vector.extract_strided_slice %6 {offsets = [16, 0], sizes = [16, 32], strides = [1, 1]} : vector<32x64xf32> to vector<16x32xf32>
    %91 = vector.extract_strided_slice %6 {offsets = [16, 32], sizes = [16, 32], strides = [1, 1]} : vector<32x64xf32> to vector<16x32xf32>
    %cst_36 = arith.constant 0.000000e+00 : f32
    %92 = vector.broadcast %cst_36 : f32 to vector<8x32xf32>
    %93 = vector.extract_strided_slice %7 {offsets = [0, 0], sizes = [8, 8], strides = [1, 1]} : vector<8x32xf32> to vector<8x8xf32>
    %94 = vector.extract_strided_slice %90 {offsets = [0, 0], sizes = [16, 8], strides = [1, 1]} : vector<16x32xf32> to vector<16x8xf32>
    %95 = vector.extract_strided_slice %91 {offsets = [0, 0], sizes = [16, 8], strides = [1, 1]} : vector<16x32xf32> to vector<16x8xf32>
    %cst_37 = arith.constant dense<0.000000e+00> : vector<8x16xf32>
    %96 = tpu.matmul %93, %94, %cst_37 {dimension_numbers = #tpu.dot_dimension_numbers<[1], [1], [0], [0], [0, 0, 1, 0], [], []>} : vector<8x8xf32>, vector<16x8xf32>, vector<8x16xf32> -> vector<8x16xf32>
    %cst_38 = arith.constant dense<0xFF800000> : vector<8xf32>
    %97 = vector.multi_reduction <maximumf>, %96, %cst_38 [1] : vector<8x16xf32> to vector<8xf32>
    %98 = vector.shape_cast %97 : vector<8xf32> to vector<8x1xf32>
    %99 = vector.broadcast %98 : vector<8x1xf32> to vector<8x16xf32>
    %100 = arith.subf %96, %99 : vector<8x16xf32>
    %101 = math.exp %100 : vector<8x16xf32>
    %cst_39 = arith.constant dense<0.000000e+00> : vector<8xf32>
    %102 = vector.multi_reduction <add>, %101, %cst_39 [1] : vector<8x16xf32> to vector<8xf32>
    %103 = vector.shape_cast %102 : vector<8xf32> to vector<8x1xf32>
    %104 = tpu.reciprocal %103 {approx = true} : vector<8x1xf32> -> vector<8x1xf32>
    %105 = vector.broadcast %104 : vector<8x1xf32> to vector<8x16xf32>
    %106 = arith.mulf %101, %105 : vector<8x16xf32>
    %cst_40 = arith.constant dense<0.000000e+00> : vector<8x8xf32>
    %107 = tpu.matmul %106, %95, %cst_40 {dimension_numbers = #tpu.dot_dimension_numbers<[1], [0], [0], [1], [0, 0, 1, 1], [], []>} : vector<8x16xf32>, vector<16x8xf32>, vector<8x8xf32> -> vector<8x8xf32>
    %108 = vector.extract_strided_slice %8 {offsets = [0, 0], sizes = [8, 32], strides = [1, 1]} : vector<32x32xf32> to vector<8x32xf32>
    %cst_41 = arith.constant dense<0.000000e+00> : vector<8x32xf32>
    %109 = tpu.matmul %107, %108, %cst_41 {dimension_numbers = #tpu.dot_dimension_numbers<[1], [0], [0], [1], [0, 0, 1, 1], [], []>} : vector<8x8xf32>, vector<8x32xf32>, vector<8x32xf32> -> vector<8x32xf32>
    %110 = arith.addf %92, %109 : vector<8x32xf32>
    %111 = vector.extract_strided_slice %7 {offsets = [0, 8], sizes = [8, 8], strides = [1, 1]} : vector<8x32xf32> to vector<8x8xf32>
    %112 = vector.extract_strided_slice %90 {offsets = [0, 8], sizes = [16, 8], strides = [1, 1]} : vector<16x32xf32> to vector<16x8xf32>
    %113 = vector.extract_strided_slice %91 {offsets = [0, 8], sizes = [16, 8], strides = [1, 1]} : vector<16x32xf32> to vector<16x8xf32>
    %cst_42 = arith.constant dense<0.000000e+00> : vector<8x16xf32>
    %114 = tpu.matmul %111, %112, %cst_42 {dimension_numbers = #tpu.dot_dimension_numbers<[1], [1], [0], [0], [0, 0, 1, 0], [], []>} : vector<8x8xf32>, vector<16x8xf32>, vector<8x16xf32> -> vector<8x16xf32>
    %cst_43 = arith.constant dense<0xFF800000> : vector<8xf32>
    %115 = vector.multi_reduction <maximumf>, %114, %cst_43 [1] : vector<8x16xf32> to vector<8xf32>
    %116 = vector.shape_cast %115 : vector<8xf32> to vector<8x1xf32>
    %117 = vector.broadcast %116 : vector<8x1xf32> to vector<8x16xf32>
    %118 = arith.subf %114, %117 : vector<8x16xf32>
    %119 = math.exp %118 : vector<8x16xf32>
    %cst_44 = arith.constant dense<0.000000e+00> : vector<8xf32>
    %120 = vector.multi_reduction <add>, %119, %cst_44 [1] : vector<8x16xf32> to vector<8xf32>
    %121 = vector.shape_cast %120 : vector<8xf32> to vector<8x1xf32>
    %122 = tpu.reciprocal %121 {approx = true} : vector<8x1xf32> -> vector<8x1xf32>
    %123 = vector.broadcast %122 : vector<8x1xf32> to vector<8x16xf32>
    %124 = arith.mulf %119, %123 : vector<8x16xf32>
    %cst_45 = arith.constant dense<0.000000e+00> : vector<8x8xf32>
    %125 = tpu.matmul %124, %113, %cst_45 {dimension_numbers = #tpu.dot_dimension_numbers<[1], [0], [0], [1], [0, 0, 1, 1], [], []>} : vector<8x16xf32>, vector<16x8xf32>, vector<8x8xf32> -> vector<8x8xf32>
    %126 = vector.extract_strided_slice %8 {offsets = [8, 0], sizes = [8, 32], strides = [1, 1]} : vector<32x32xf32> to vector<8x32xf32>
    %cst_46 = arith.constant dense<0.000000e+00> : vector<8x32xf32>
    %127 = tpu.matmul %125, %126, %cst_46 {dimension_numbers = #tpu.dot_dimension_numbers<[1], [0], [0], [1], [0, 0, 1, 1], [], []>} : vector<8x8xf32>, vector<8x32xf32>, vector<8x32xf32> -> vector<8x32xf32>
    %128 = arith.addf %110, %127 : vector<8x32xf32>
    %129 = vector.extract_strided_slice %7 {offsets = [0, 16], sizes = [8, 8], strides = [1, 1]} : vector<8x32xf32> to vector<8x8xf32>
    %130 = vector.extract_strided_slice %90 {offsets = [0, 16], sizes = [16, 8], strides = [1, 1]} : vector<16x32xf32> to vector<16x8xf32>
    %131 = vector.extract_strided_slice %91 {offsets = [0, 16], sizes = [16, 8], strides = [1, 1]} : vector<16x32xf32> to vector<16x8xf32>
    %cst_47 = arith.constant dense<0.000000e+00> : vector<8x16xf32>
    %132 = tpu.matmul %129, %130, %cst_47 {dimension_numbers = #tpu.dot_dimension_numbers<[1], [1], [0], [0], [0, 0, 1, 0], [], []>} : vector<8x8xf32>, vector<16x8xf32>, vector<8x16xf32> -> vector<8x16xf32>
    %cst_48 = arith.constant dense<0xFF800000> : vector<8xf32>
    %133 = vector.multi_reduction <maximumf>, %132, %cst_48 [1] : vector<8x16xf32> to vector<8xf32>
    %134 = vector.shape_cast %133 : vector<8xf32> to vector<8x1xf32>
    %135 = vector.broadcast %134 : vector<8x1xf32> to vector<8x16xf32>
    %136 = arith.subf %132, %135 : vector<8x16xf32>
    %137 = math.exp %136 : vector<8x16xf32>
    %cst_49 = arith.constant dense<0.000000e+00> : vector<8xf32>
    %138 = vector.multi_reduction <add>, %137, %cst_49 [1] : vector<8x16xf32> to vector<8xf32>
    %139 = vector.shape_cast %138 : vector<8xf32> to vector<8x1xf32>
    %140 = tpu.reciprocal %139 {approx = true} : vector<8x1xf32> -> vector<8x1xf32>
    %141 = vector.broadcast %140 : vector<8x1xf32> to vector<8x16xf32>
    %142 = arith.mulf %137, %141 : vector<8x16xf32>
    %cst_50 = arith.constant dense<0.000000e+00> : vector<8x8xf32>
    %143 = tpu.matmul %142, %131, %cst_50 {dimension_numbers = #tpu.dot_dimension_numbers<[1], [0], [0], [1], [0, 0, 1, 1], [], []>} : vector<8x16xf32>, vector<16x8xf32>, vector<8x8xf32> -> vector<8x8xf32>
    %144 = vector.extract_strided_slice %8 {offsets = [16, 0], sizes = [8, 32], strides = [1, 1]} : vector<32x32xf32> to vector<8x32xf32>
    %cst_51 = arith.constant dense<0.000000e+00> : vector<8x32xf32>
    %145 = tpu.matmul %143, %144, %cst_51 {dimension_numbers = #tpu.dot_dimension_numbers<[1], [0], [0], [1], [0, 0, 1, 1], [], []>} : vector<8x8xf32>, vector<8x32xf32>, vector<8x32xf32> -> vector<8x32xf32>
    %146 = arith.addf %128, %145 : vector<8x32xf32>
    %147 = vector.extract_strided_slice %7 {offsets = [0, 24], sizes = [8, 8], strides = [1, 1]} : vector<8x32xf32> to vector<8x8xf32>
    %148 = vector.extract_strided_slice %90 {offsets = [0, 24], sizes = [16, 8], strides = [1, 1]} : vector<16x32xf32> to vector<16x8xf32>
    %149 = vector.extract_strided_slice %91 {offsets = [0, 24], sizes = [16, 8], strides = [1, 1]} : vector<16x32xf32> to vector<16x8xf32>
    %cst_52 = arith.constant dense<0.000000e+00> : vector<8x16xf32>
    %150 = tpu.matmul %147, %148, %cst_52 {dimension_numbers = #tpu.dot_dimension_numbers<[1], [1], [0], [0], [0, 0, 1, 0], [], []>} : vector<8x8xf32>, vector<16x8xf32>, vector<8x16xf32> -> vector<8x16xf32>
    %cst_53 = arith.constant dense<0xFF800000> : vector<8xf32>
    %151 = vector.multi_reduction <maximumf>, %150, %cst_53 [1] : vector<8x16xf32> to vector<8xf32>
    %152 = vector.shape_cast %151 : vector<8xf32> to vector<8x1xf32>
    %153 = vector.broadcast %152 : vector<8x1xf32> to vector<8x16xf32>
    %154 = arith.subf %150, %153 : vector<8x16xf32>
    %155 = math.exp %154 : vector<8x16xf32>
    %cst_54 = arith.constant dense<0.000000e+00> : vector<8xf32>
    %156 = vector.multi_reduction <add>, %155, %cst_54 [1] : vector<8x16xf32> to vector<8xf32>
    %157 = vector.shape_cast %156 : vector<8xf32> to vector<8x1xf32>
    %158 = tpu.reciprocal %157 {approx = true} : vector<8x1xf32> -> vector<8x1xf32>
    %159 = vector.broadcast %158 : vector<8x1xf32> to vector<8x16xf32>
    %160 = arith.mulf %155, %159 : vector<8x16xf32>
    %cst_55 = arith.constant dense<0.000000e+00> : vector<8x8xf32>
    %161 = tpu.matmul %160, %149, %cst_55 {dimension_numbers = #tpu.dot_dimension_numbers<[1], [0], [0], [1], [0, 0, 1, 1], [], []>} : vector<8x16xf32>, vector<16x8xf32>, vector<8x8xf32> -> vector<8x8xf32>
    %162 = vector.extract_strided_slice %8 {offsets = [24, 0], sizes = [8, 32], strides = [1, 1]} : vector<32x32xf32> to vector<8x32xf32>
    %cst_56 = arith.constant dense<0.000000e+00> : vector<8x32xf32>
    %163 = tpu.matmul %161, %162, %cst_56 {dimension_numbers = #tpu.dot_dimension_numbers<[1], [0], [0], [1], [0, 0, 1, 1], [], []>} : vector<8x8xf32>, vector<8x32xf32>, vector<8x32xf32> -> vector<8x32xf32>
    %164 = arith.addf %146, %163 : vector<8x32xf32>
    %165 = vector.broadcast %9 : vector<1x32xf32> to vector<8x32xf32>
    %166 = arith.addf %164, %165 : vector<8x32xf32>
    %c1 = arith.constant 1 : index
    %c0_57 = arith.constant 0 : index
    %c0_58 = arith.constant 0 : index
    %167 = vector.load %arg7[%c1, %c0_57, %c0_58] : memref<2x8x32xf32, #tpu.memory_space<vmem>>, vector<1x8x32xf32>
    %168 = vector.shape_cast %167 : vector<1x8x32xf32> to vector<8x32xf32>
    %169 = vector.shape_cast %166 : vector<8x32xf32> to vector<1x8x32xf32>
    tpu.vector_store %arg7[%c1, %c0_57, %c0_58], %169 {strides = array<i32>} : memref<2x8x32xf32, #tpu.memory_space<vmem>>, vector<1x8x32xf32>,
    return
  }
  func.func @transform_0(%arg0: i32) -> (i32, i32, i32) {
    %c0_i32 = arith.constant 0 : i32
    %c0_i32_0 = arith.constant 0 : i32
    %c0_i32_1 = arith.constant 0 : i32
    return %arg0, %c0_i32, %c0_i32_0 : i32, i32, i32
  }
  func.func @transform_1(%arg0: i32) -> (i32, i32) {
    %c0_i32 = arith.constant 0 : i32
    %c0_i32_0 = arith.constant 0 : i32
    %c0_i32_1 = arith.constant 0 : i32
    return %c0_i32, %c0_i32_0 : i32, i32
  }
  func.func @transform_2(%arg0: i32) -> (i32, i32) {
    %c0_i32 = arith.constant 0 : i32
    %c0_i32_0 = arith.constant 0 : i32
    %c0_i32_1 = arith.constant 0 : i32
    return %c0_i32, %c0_i32_0 : i32, i32
  }
  func.func @transform_3(%arg0: i32) -> (i32, i32) {
    %c0_i32 = arith.constant 0 : i32
    %c0_i32_0 = arith.constant 0 : i32
    %c0_i32_1 = arith.constant 0 : i32
    return %c0_i32, %c0_i32_0 : i32, i32
  }
  func.func @transform_4(%arg0: i32) -> (i32, i32) {
    %c0_i32 = arith.constant 0 : i32
    %c0_i32_0 = arith.constant 0 : i32
    %c0_i32_1 = arith.constant 0 : i32
    return %c0_i32, %c0_i32_0 : i32, i32
  }
  func.func @transform_5(%arg0: i32) -> (i32, i32) {
    %c0_i32 = arith.constant 0 : i32
    %c0_i32_0 = arith.constant 0 : i32
    %c0_i32_1 = arith.constant 0 : i32
    return %c0_i32, %c0_i32_0 : i32, i32
  }
  func.func @transform_6(%arg0: i32) -> (i32, i32, i32) {
    %c0_i32 = arith.constant 0 : i32
    %c0_i32_0 = arith.constant 0 : i32
    %c0_i32_1 = arith.constant 0 : i32
    return %arg0, %c0_i32, %c0_i32_0 : i32, i32, i32
  }
}

</mosaic_0001>

<bundles_post_ra>
// kernel: tpu_custom_call.1
= control target key start
LH: loop header
LB: loop body
LE: loop exit
PB: predicated region body
PF: predicated region fallthrough
CT: control target
= control target key end

     0   :  { %11 = vsyncpa [#allocation3], 0  ;;  %s2976_s0 = inlined_call_operand.hbm [shape: f32[2,16,32], index: 0, kind: input, shape index: {}]   ;;  %s2977_s1 = inlined_call_operand.hbm [shape: f32[8,32], index: 1, kind: input, shape index: {}]   ;;  %s2978_s2 = inlined_call_operand.hbm [shape: f32[32,64], index: 2, kind: input, shape index: {}]   ;;  %s2979_s3 = inlined_call_operand.vmem [shape: f32[1,64], index: 3, kind: input, shape index: {}]   ;;  %s2980_s4 = inlined_call_operand.hbm [shape: f32[32,32], index: 4, kind: input, shape index: {}]   ;;  %s2981_s5 = inlined_call_operand.vmem [shape: f32[1,32], index: 5, kind: input, shape index: {}]   ;;  %s2982_s6 = inlined_call_operand.hbm [shape: f32[2,8,32], index: 6, kind: output, shape index: {}]  }
   0x1   :  { %12 = vsyncpa [#allocation6], 0 }
   0x2   :  { %13 = vsyncpa [#allocation9], 0 }
   0x3   :  { %14 = vsyncpa [#allocation4], 0  ;;  %s2611_s21 = smov [#allocation5]   ;;  %s2612_s23 = smov [#allocation2]  }
   0x4   :  { %s33_s22 = sshll.u32 %s2611_s21, 4  ;;  %s20_s24 = sshll.u32 %s2612_s23, 4  ;;  %s34_s22 = int_to_ptr.vmem [resolvable:$true] %s33_s22  ;;  %s21_s24 = int_to_ptr.vmem [resolvable:$true] %s20_s24 }
   0x5   :  { %s2511_s25 = scalar_lea.vmem %s34_s22, 128  ;;  %p2516_p1 = scmp.lt.s32.totalorder %s34_s22, %s34_s22 }
   0x6   :  { %p2512_p0 = scmp.ne.s32.totalorder %s34_s22, %s2511_s25  ;;  %p2517_p2 = scmp.lt.s32.totalorder %s2511_s25, %s2511_s25 }
   0x8   :  { %p2518_p3 = por %p2517_p2, %p2516_p1 }
   0xa   :  { %p2519_p4 = pnand %p2518_p3, %p2512_p0 }
   0xc   :  { %2522 = shalt.err (!%p2519_p4)
}
   0xd   :  { %36 = dma.hbm_to_vmem [thread:$0]  %s2977_s1, 128, %s34_s22, [#allocation6]  }
   0xe   :  { %s2531_s28 = scalar_lea.vmem %s21_s24, 512  ;;  %p2536_p6 = scmp.lt.s32.totalorder %s21_s24, %s21_s24 }
   0xf   :  { %p2532_p5 = scmp.ne.s32.totalorder %s21_s24, %s2531_s28  ;;  %p2537_p7 = scmp.lt.s32.totalorder %s2531_s28, %s2531_s28 }
  0x11   :  { %p2538_p8 = por %p2537_p7, %p2536_p6 }
  0x13   :  { %p2539_p9 = pnand %p2538_p8, %p2532_p5 }
  0x15   :  { %2542 = shalt.err (!%p2539_p9)
}
  0x16   :  { %s2613_s29 = smov 128   ;;  %s2614_s30 = smov 8  }
  0x17   :  { %26 = dma.hbm_to_vmem [thread:$0]  %s2976_s0, 512, %s21_s24, [#allocation3], %s2613_s29, %s2613_s29, %s2614_s30  }
  0x18   :  { %s2615_s9 = smov [#allocation7]   ;;  %s2616_s11 = smov [#allocation8]  }
  0x19   :  { %s42_s10 = sshll.u32 %s2615_s9, 4  ;;  %s56_s1 = sshll.u32 %s2616_s11, 4  ;;  %s43_s10 = int_to_ptr.vmem [resolvable:$true] %s42_s10  ;;  %s57_s1 = int_to_ptr.vmem [resolvable:$true] %s56_s1 }
  0x1a   :  { %s2551_s12 = scalar_lea.vmem %s43_s10, 512  ;;  %p2556_p11 = scmp.lt.s32.totalorder %s43_s10, %s43_s10 }
  0x1b   :  { %p2552_p10 = scmp.ne.s32.totalorder %s43_s10, %s2551_s12  ;;  %p2557_p12 = scmp.lt.s32.totalorder %s2551_s12, %s2551_s12 }
  0x1d   :  { %p2558_p13 = por %p2557_p12, %p2556_p11 }
  0x1f   :  { %p2559_p0 = pnand %p2558_p13, %p2552_p10 }
  0x21   :  { %2562 = shalt.err (!%p2559_p0)
}
  0x22   :  { %48 = dma.hbm_to_vmem [thread:$0]  %s2978_s2, 512, %s43_s10, [#allocation6], %s2613_s29, %s2613_s29, %s2614_s30  }
  0x23   :  { %s2571_s0 = scalar_lea.vmem %s57_s1, 512  ;;  %p2576_p2 = scmp.lt.s32.totalorder %s57_s1, %s57_s1 }
  0x24   :  { %p2572_p1 = scmp.ne.s32.totalorder %s57_s1, %s2571_s0  ;;  %p2577_p3 = scmp.lt.s32.totalorder %s2571_s0, %s2571_s0 }
  0x26   :  { %p2578_p4 = por %p2577_p3, %p2576_p2 }
  0x28   :  { %p2579_p5 = pnand %p2578_p4, %p2572_p1 }
  0x2a   :  { %2582 = shalt.err (!%p2579_p5)
}
  0x2b   :  { %62 = dma.hbm_to_vmem [thread:$0]  %s2980_s4, 512, %s57_s1, [#allocation9], %s2613_s29, %s2613_s29, %s2614_s30  }
  0x2c   :  { %2603 = dma.done.wait [#allocation3], 512  }
  0x2d   :  { %2604 = vsyncadd [#allocation3], 4294966784 }
  0x2e   :  { %2605 = dma.done.wait [#allocation6], 640  }
  0x2f   :  { %2606 = vsyncadd [#allocation6], 4294966656 }
  0x30   :  { %2607 = dma.done.wait [#allocation9], 512  }
  0x31   :  { %2608 = vsyncadd [#allocation9], 4294966784  ;;  %vm92_vm0 = vcmask 261120   ;;  %v84_v0 = vld [vmem:[#allocation7 + $0x18] sm:$0xff]  ;;  %v83_v1 = vld [vmem:[#allocation7 + $0x10] sm:$0xff]  ;;  %v2617_v6 = vmov 0.0  }
  0x32   :  { %2289 = vmatprep.subr.mxu0 %v84_v0  ;;  %v77_v2 = vld [vmem:[#allocation2] sm:$0xff]  ;;  %v82_v3 = vld [vmem:[#allocation7 + $0x8] sm:$0xff]  ;;  %v81_v4 = vld [vmem:[#allocation7] sm:$0xff]  ;;  %2303 = vmatprep.subr.mxu1 %v2617_v6  ;;  %vm2618_vm1 = vmmov 0   ;;  %s2619_s2 = smov 120   ;;  %vm196_vm2 = vcmask 64512  }
  0x33   :  { %2290 = vmatpush3.msra.mxu0 %v84_v0  ;;  %2297 = vmatprep.mubr.msk.f32.mxu0 %vm92_vm0, %v77_v2  ;;  %v78_v5 = vld [vmem:[#allocation2 + $0x8] sm:$0xff]  ;;  %v2687_v7 = vld [vmem:[#allocation5] sm:$0xff]  ;;  %v79_v8 = vld [vmem:[#allocation2 + $0x10] sm:$0xff]  ;;  %vm276_vm3 = vcmask 130048   ;;  %s2621_s18 = smov 88   ;;  %s2622_s19 = smov 112  }
  0x34   :  { %2291 = vmatprep.subr.mxu0 %v83_v1  ;;  %2307 = vmatprep.mubr.msk.f32.mxu1 %vm2618_vm1, %v2617_v6  ;;  %v80_v9 = vld [vmem:[#allocation2 + $0x18] sm:$0xff]  ;;  %v2700_v10 = vld [vmem:[%s2979_s3] ss:$0 sm:$0xff]  ;;  %s2620_s3 = smov 96   ;;  %s2623_s20 = smov 104   ;;  %v2765_v41 = vld [vmem:[#allocation8 + $0x8] sm:$0xff] }
  0x35   :  { %2292 = vmatpush3.msra.mxu0 %v83_v1  ;;  %367 = vrot.lane.b32.xlu1 %v2687_v7, %s2619_s2  ;;  %v2771_v47 = vld [vmem:[#allocation8] sm:$0xff]  ;;  %s2624_s21 = smov 80   ;;  %s2625_s22 = smov 72  }
  0x36   :  { %2293 = vmatprep.subr.mxu0 %v82_v3 }
  0x37   :  { %2294 = vmatpush3.msra.mxu0 %v82_v3 }
  0x38   :  { %2295 = vmatprep.subr.mxu0 %v81_v4 }
  0x39   :  { %2296 = vmatpush3.msra.mxu0 %v81_v4 }
  0x3a   :  { %2298 = vmatmul.mubr.msk.f32.vlgmr.msra.gmra.mxu0 %vm92_vm0, %v78_v5  ;;  %2317 = vmatprep.subr.mxu0 %v2617_v6 }
  0x3b   :  { %2300 = vmatprep.mubr.msk.f32.mxu0 %vm92_vm0, %v79_v8 }
  0x3e   :  { %2301 = vmatmul.mubr.msk.f32.gmra.mxu0 %vm92_vm0, %v80_v9 }
  0x3f   :  { %2321 = vmatprep.mubr.msk.f32.mxu0 %vm2618_vm1, %v2617_v6 }
  0xa7   :  { %v2725_v17 = vpop.permute.xlu1 %367 }
  0xfa   :  { %v2299_v11 = vpop.f32.mrf.mxu0 }
  0xfb   :  { %v2703_v12 = vadd.f32 %v2299_v11, %v2700_v10 }
  0xfc   :  { %v171_v13 = vpop.f32.mrf.mxu0 }
  0xfd   :  { %371 = vrot.lane.b32.xlu0 %v2703_v12, %s2619_s2  ;;  %2304 = vmatpush3.xpose.msk.msra.mxu1 %vm196_vm2, %v2703_v12  ;;  %v2711_v14 = vadd.f32 %v2700_v10, %v171_v13 }
  0xfe   :  { %2305 = vmatprep.subr.mxu1 %v2617_v6  ;;  %v2735_v21 = vpop.f32.mrf.mxu0 }
  0xff   :  { %v2802_v58 = vadd.f32 %v2735_v21, %v2700_v10 }
 0x100   :  { %v2737_v22 = vpop.f32.mrf.mxu0 }
 0x101   :  { %369 = vrot.lane.b32.xlu0 %v2711_v14, %s2619_s2  ;;  %2306 = vmatpush3.xpose.msk.msra.mxu1 %vm196_vm2, %v2711_v14  ;;  %v2813_v59 = vadd.f32 %v2700_v10, %v2737_v22 }
 0x102   :  { %2310 = vmatprep.subr.mxu1 %v2617_v6 }
 0x104   :  { %2308 = vmatmul.mubr.msk.f32.vlgmr.msra.gmra.mxu1 %vm196_vm2, %v2687_v7 }
 0x105   :  { %2314 = vmatprep.mubr.msk.f32.mxu1 %vm2618_vm1, %v2617_v6 }
 0x16f   :  { %v372_v15 = vpop.permute.xlu0 %371 }
 0x170   :  { %2318 = vmatpush3.xpose.msk.msra.mxu0 %vm196_vm2, %v372_v15 }
 0x171   :  { %2319 = vmatprep.subr.mxu0 %v2617_v6 }
 0x173   :  { %v370_v16 = vpop.permute.xlu0 %369 }
 0x174   :  { %2320 = vmatpush3.xpose.msk.msra.mxu0 %vm196_vm2, %v370_v16 }
 0x175   :  { %2331 = vmatprep.subr.mxu0 %v2617_v6 }
 0x177   :  { %2322 = vmatmul.mubr.msk.f32.vlgmr.msra.gmra.mxu0 %vm196_vm2, %v2725_v17 }
 0x178   :  { %2333 = vmatprep.mubr.msk.f32.mxu0 %vm2618_vm1, %v2617_v6  ;;  %2332 = vmatpush3.msra.mxu0 %v2765_v41 }
 0x179   :  { %2341 = vmatprep.subr.mxu0 %v2617_v6 }
 0x1c4   :  { %v272_v18 = vpop.f32.mrf.mxu1 }
 0x1c5   :  { %v277_v19 = vsel %vm276_vm3, %v272_v18, -inf }
 0x1c6   :  { %278 = vmax.xlane.f32.xlu1 %v277_v19  ;;  %v2309_v20 = vpop.f32.mrf.mxu1 }
 0x1d7   :  { %288 = vrot.lane.b32.xlu1 %v2711_v14, %s2620_s3 }
 0x237   :  { %v445_v23 = vpop.f32.mrf.mxu0 }
 0x238   :  { %v449_v24 = vsel %vm276_vm3, %v445_v23, -inf }
 0x239   :  { %450 = vmax.xlane.f32.xlu0 %v449_v24  ;;  %v2323_v25 = vpop.f32.mrf.mxu0 }
 0x24f   :  { %290 = vrot.lane.b32.xlu0 %v2703_v12, %s2620_s3  ;;  %v279_v26 = vpop.xlane.xlu1 %278 }
 0x250   :  { %v280_v27 = vsub.f32 %v272_v18, %v279_v26 }
 0x252   :  { %v281_v28 = vmul.f32 1.442695, %v280_v27 }
 0x253   :  { %v289_v35 = vpop.permute.xlu1 %288 }
 0x254   :  { %2471 = vpow2.f32 %v281_v28 }
 0x261   :  { %v2472_v29 = vpop.eup %2471 }
 0x262   :  { %v283_v30 = vsel %vm276_vm3, %v2472_v29, 0.0 }
 0x26e   :  { %284 = vadd.xlane.f32.xlu0 %v283_v30 }
 0x284   :  { %460 = vrot.lane.b32.xlu0 %v2711_v14, %s2621_s18 }
 0x288   :  { %687 = vrot.lane.b32.xlu0 %v2711_v14, %s2622_s19 }
 0x28c   :  { %935 = vrot.lane.b32.xlu0 %v2703_v12, %s2623_s20 }
 0x290   :  { %931 = vrot.lane.b32.xlu0 %v2687_v7, %s2623_s20 }
 0x2c2   :  { %v451_v31 = vpop.xlane.xlu0 %450 }
 0x2c3   :  { %v452_v32 = vsub.f32 %v445_v23, %v451_v31 }
 0x2c5   :  { %v453_v33 = vmul.f32 1.442695, %v452_v32  ;;  %v2850_v32 = vld [vmem:[#allocation8 + $0x10] sm:$0xff] }
 0x2c6   :  { %v291_v34 = vpop.permute.xlu0 %290 }
 0x2c7   :  { %2473 = vpow2.f32 %v453_v33  ;;  %2311 = vmatpush3.msra.mxu1 %v291_v34 }
 0x2c8   :  { %2312 = vmatprep.subr.mxu1 %v2617_v6 }
 0x2c9   :  { %2313 = vmatpush3.msra.mxu1 %v289_v35 }
 0x2ca   :  { %2324 = vmatprep.subr.mxu1 %v2617_v6 }
 0x2d4   :  { %v2474_v36 = vpop.eup %2473 }
 0x2d5   :  { %v455_v37 = vsel %vm276_vm3, %v2474_v36, 0.0 }
 0x2d6   :  { %456 = vadd.xlane.f32.xlu1 %v455_v37 }
 0x2e7   :  { %462 = vrot.lane.b32.xlu1 %v2703_v12, %s2621_s18 }
 0x2eb   :  { %689 = vrot.lane.b32.xlu1 %v2703_v12, %s2622_s19 }
 0x2ef   :  { %685 = vrot.lane.b32.xlu1 %v2687_v7, %s2622_s19 }
 0x2f3   :  { %933 = vrot.lane.b32.xlu1 %v2711_v14, %s2623_s20 }
 0x2f7   :  { %v285_v38 = vpop.xlane.xlu0 %284 }
 0x2f8   :  { %2475 = vrcp.f32 %v285_v38 }
 0x2fb   :  { %v461_v44 = vpop.permute.xlu0 %460 }
 0x2ff   :  { %v688_v53 = vpop.permute.xlu0 %687 }
 0x303   :  { %v936_v55 = vpop.permute.xlu0 %935 }
 0x305   :  { %v2476_v39 = vpop.eup %2475 }
 0x306   :  { %v287_v40 = vmul.f32 %v2476_v39, %v2472_v29  ;;  %v2865_v39 = vld [vmem:[#allocation8 + $0x18] sm:$0xff] }
 0x307   :  { %v2797_v57 = vpop.permute.xlu0 %931 }
 0x308   :  { %2315 = vmatmul.mubr.msk.f32.vlgmr.msra.gmra.mxu1 %vm276_vm3, %v287_v40 }
 0x309   :  { %2328 = vmatprep.mubr.msk.f32.mxu1 %vm2618_vm1, %v2617_v6 }
 0x35f   :  { %v457_v42 = vpop.xlane.xlu1 %456 }
 0x360   :  { %2477 = vrcp.f32 %v457_v42 }
 0x363   :  { %v463_v43 = vpop.permute.xlu1 %462 }
 0x364   :  { %2325 = vmatpush3.msra.mxu1 %v463_v43 }
 0x365   :  { %2326 = vmatprep.subr.mxu1 %v2617_v6 }
 0x366   :  { %2327 = vmatpush3.msra.mxu1 %v461_v44 }
 0x367   :  { %2336 = vmatprep.subr.mxu1 %v2617_v6  ;;  %v690_v51 = vpop.permute.xlu1 %689 }
 0x36b   :  { %v2787_v54 = vpop.permute.xlu1 %685 }
 0x36d   :  { %v2478_v45 = vpop.eup %2477 }
 0x36e   :  { %v459_v46 = vmul.f32 %v2478_v45, %v2474_v36 }
 0x36f   :  { %v934_v56 = vpop.permute.xlu1 %933 }
 0x370   :  { %2329 = vmatmul.mubr.msk.f32.vlgmr.msra.gmra.mxu1 %vm276_vm3, %v459_v46 }
 0x371   :  { %2337 = vmatpush3.msra.mxu1 %v2771_v47  ;;  %2338 = vmatprep.mubr.msk.f32.mxu1 %vm2618_vm1, %v2617_v6 }
 0x372   :  { %2348 = vmatprep.subr.mxu1 %v2617_v6 }
 0x3c8   :  { %v363_v48 = vpop.f32.mrf.mxu1 }
 0x3c9   :  { %2339 = vmatmul.mubr.msk.f32.vlgmr.msra.gmra.mxu1 %vm196_vm2, %v363_v48 }
 0x3ca   :  { %v2316_v49 = vpop.f32.mrf.mxu1  ;;  %2352 = vmatprep.mubr.msk.f32.mxu1 %vm2618_vm1, %v2617_v6 }
 0x430   :  { %v535_v50 = vpop.f32.mrf.mxu1 }
 0x431   :  { %2334 = vmatmul.mubr.msk.f32.vlgmr.msra.gmra.mxu0 %vm196_vm2, %v535_v50 }
 0x432   :  { %2342 = vmatpush3.xpose.msk.msra.mxu0 %vm196_vm2, %v690_v51  ;;  %v2330_v52 = vpop.f32.mrf.mxu1  ;;  %2345 = vmatprep.mubr.msk.f32.mxu0 %vm2618_vm1, %v2617_v6 }
 0x433   :  { %2343 = vmatprep.subr.mxu0 %v2617_v6 }
 0x436   :  { %2344 = vmatpush3.xpose.msk.msra.mxu0 %vm196_vm2, %v688_v53 }
 0x437   :  { %2360 = vmatprep.subr.mxu0 %v2617_v6 }
 0x439   :  { %2346 = vmatmul.mubr.msk.f32.vlgmr.msra.gmra.mxu0 %vm196_vm2, %v2787_v54 }
 0x43a   :  { %2361 = vmatpush3.xpose.msk.msra.mxu0 %vm196_vm2, %v936_v55  ;;  %2364 = vmatprep.mubr.msk.f32.mxu0 %vm2618_vm1, %v2617_v6 }
 0x43b   :  { %2362 = vmatprep.subr.mxu0 %v2617_v6 }
 0x43e   :  { %2363 = vmatpush3.xpose.msk.msra.mxu0 %vm196_vm2, %v934_v56  ;;  %v2892_v56 = vld [vmem:[%s2981_s5] ss:$0 sm:$0xff]  ;;  %s2626_s5 = smov [#allocation10]  }
 0x43f   :  { %2379 = vmatprep.subr.mxu0 %v2617_v6  ;;  %s2157_s25 = sshll.u32 %s2626_s5, 4  ;;  %s2158_s25 = int_to_ptr.vmem [resolvable:$true] %s2157_s25 }
 0x440   :  { %s2583_s26 = scalar_lea.vmem %s2158_s25, 256  ;;  %p2588_p7 = scmp.lt.s32.totalorder %s2158_s25, %s2158_s25 }
 0x441   :  { %2365 = vmatmul.mubr.msk.f32.vlgmr.msra.gmra.mxu0 %vm196_vm2, %v2797_v57  ;;  %p2584_p6 = scmp.ne.s32.totalorder %s2158_s25, %s2583_s26  ;;  %p2589_p8 = scmp.lt.s32.totalorder %s2583_s26, %s2583_s26 }
 0x442   :  { %2380 = vmatpush3.xpose.msk.msra.mxu0 %vm196_vm2, %v2802_v58  ;;  %2383 = vmatprep.mubr.msk.f32.mxu0 %vm2618_vm1, %v2617_v6 }
 0x443   :  { %2381 = vmatprep.subr.mxu0 %v2617_v6  ;;  %p2590_p9 = por %p2589_p8, %p2588_p7 }
 0x445   :  { %p2591_p10 = pnand %p2590_p9, %p2584_p6 }
 0x446   :  { %2382 = vmatpush3.xpose.msk.msra.mxu0 %vm196_vm2, %v2813_v59 }
 0x447   :  { %2400 = vmatprep.subr.mxu0 %v2617_v6 }
 0x449   :  { %2384 = vmatmul.mubr.msk.f32.vlgmr.msra.gmra.mxu0 %vm196_vm2, %v2687_v7 }
 0x44a   :  { %2404 = vmatprep.mubr.msk.f32.mxu0 %vm2618_vm1, %v2617_v6 }
 0x489   :  { %v2822_v60 = vpop.f32.mrf.mxu1 }
 0x48b   :  { %v2340_v61 = vpop.f32.mrf.mxu1 }
 0x4f1   :  { %v2824_v62 = vpop.f32.mrf.mxu0 }
 0x4f2   :  { %v682_v42 = vadd.f32 %v2822_v60, %v2824_v62 }
 0x4f3   :  { %v2335_v63 = vpop.f32.mrf.mxu0 }
 0x4f9   :  { %v763_v0 = vpop.f32.mrf.mxu0 }
 0x4fa   :  { %v767_v1 = vsel %vm276_vm3, %v763_v0, -inf }
 0x4fb   :  { %768 = vmax.xlane.f32.xlu1 %v767_v1  ;;  %v2347_v2 = vpop.f32.mrf.mxu0 }
 0x501   :  { %v1009_v3 = vpop.f32.mrf.mxu0 }
 0x502   :  { %v1013_v7 = vsel %vm276_vm3, %v1009_v3, -inf }
 0x503   :  { %v2366_v4 = vpop.f32.mrf.mxu0 }
 0x509   :  { %v1257_v5 = vpop.f32.mrf.mxu0 }
 0x50a   :  { %v1261_v9 = vsel %vm276_vm3, %v1257_v5, -inf }
 0x50b   :  { %v2385_v8 = vpop.f32.mrf.mxu0 }
 0x50c   :  { %778 = vrot.lane.b32.xlu1 %v2711_v14, %s2624_s21 }
 0x530   :  { %1014 = vmax.xlane.f32.xlu1 %v1013_v7 }
 0x541   :  { %1024 = vrot.lane.b32.xlu1 %v2711_v14, %s2625_s22 }
 0x565   :  { %1262 = vmax.xlane.f32.xlu1 %v1261_v9 }
 0x576   :  { %1272 = vrot.lane.b32.xlu1 %v2813_v59, %s2620_s3 }
 0x57a   :  { %1353 = vrot.lane.b32.xlu1 %v2802_v58, %s2619_s2 }
 0x584   :  { %v769_v10 = vpop.xlane.xlu1 %768 }
 0x585   :  { %v770_v11 = vsub.f32 %v763_v0, %v769_v10 }
 0x587   :  { %v771_v13 = vmul.f32 1.442695, %v770_v11 }
 0x588   :  { %v779_v14 = vpop.permute.xlu1 %778 }
 0x589   :  { %2479 = vpow2.f32 %v771_v13 }
 0x596   :  { %v2480_v15 = vpop.eup %2479 }
 0x597   :  { %v773_v16 = vsel %vm276_vm3, %v2480_v15, 0.0 }
 0x598   :  { %774 = vadd.xlane.f32.xlu0 %v773_v16 }
 0x5ae   :  { %780 = vrot.lane.b32.xlu0 %v2703_v12, %s2624_s21 }
 0x5b9   :  { %v1015_v18 = vpop.xlane.xlu1 %1014 }
 0x5ba   :  { %v1016_v19 = vsub.f32 %v1009_v3, %v1015_v18 }
 0x5bc   :  { %v1017_v20 = vmul.f32 1.442695, %v1016_v19 }
 0x5bd   :  { %v1025_v23 = vpop.permute.xlu1 %1024 }
 0x5be   :  { %2481 = vpow2.f32 %v1017_v20 }
 0x5cb   :  { %v2482_v21 = vpop.eup %2481 }
 0x5cc   :  { %v1019_v22 = vsel %vm276_vm3, %v2482_v21, 0.0 }
 0x5cd   :  { %1020 = vadd.xlane.f32.xlu0 %v1019_v22 }
 0x5e3   :  { %1026 = vrot.lane.b32.xlu0 %v2703_v12, %s2625_s22 }
 0x5ee   :  { %v1263_v24 = vpop.xlane.xlu1 %1262 }
 0x5ef   :  { %v1264_v25 = vsub.f32 %v1257_v5, %v1263_v24 }
 0x5f1   :  { %v1265_v26 = vmul.f32 1.442695, %v1264_v25 }
 0x5f2   :  { %v1273_v46 = vpop.permute.xlu1 %1272 }
 0x5f3   :  { %2483 = vpow2.f32 %v1265_v26 }
 0x5f6   :  { %v1354_v53 = vpop.permute.xlu1 %1353 }
 0x600   :  { %v2484_v27 = vpop.eup %2483 }
 0x601   :  { %v1267_v28 = vsel %vm276_vm3, %v2484_v27, 0.0 }
 0x602   :  { %1268 = vadd.xlane.f32.xlu0 %v1267_v28 }
 0x618   :  { %1274 = vrot.lane.b32.xlu0 %v2802_v58, %s2620_s3 }
 0x61c   :  { %1351 = vrot.lane.b32.xlu0 %v2813_v59, %s2619_s2 }
 0x621   :  { %v775_v29 = vpop.xlane.xlu0 %774 }
 0x622   :  { %2485 = vrcp.f32 %v775_v29 }
 0x625   :  { %v781_v30 = vpop.permute.xlu0 %780 }
 0x626   :  { %2349 = vmatpush3.msra.mxu1 %v781_v30 }
 0x627   :  { %2350 = vmatprep.subr.mxu1 %v2617_v6 }
 0x628   :  { %2351 = vmatpush3.msra.mxu1 %v779_v14 }
 0x629   :  { %2355 = vmatprep.subr.mxu1 %v2617_v6 }
 0x62f   :  { %v2486_v12 = vpop.eup %2485 }
 0x630   :  { %v777_v31 = vmul.f32 %v2486_v12, %v2480_v15 }
 0x632   :  { %2353 = vmatmul.mubr.msk.f32.vlgmr.msra.gmra.mxu1 %vm276_vm3, %v777_v31 }
 0x633   :  { %2356 = vmatpush3.msra.mxu1 %v2850_v32  ;;  %2357 = vmatprep.mubr.msk.f32.mxu1 %vm2618_vm1, %v2617_v6 }
 0x634   :  { %2367 = vmatprep.subr.mxu1 %v2617_v6 }
 0x656   :  { %v1021_v33 = vpop.xlane.xlu0 %1020 }
 0x657   :  { %2487 = vrcp.f32 %v1021_v33 }
 0x65a   :  { %v1027_v36 = vpop.permute.xlu0 %1026 }
 0x664   :  { %v2488_v34 = vpop.eup %2487 }
 0x665   :  { %v1023_v38 = vmul.f32 %v2488_v34, %v2482_v21 }
 0x68b   :  { %v1269_v40 = vpop.xlane.xlu0 %1268 }
 0x68c   :  { %2489 = vrcp.f32 %v1269_v40 }
 0x68f   :  { %v1275_v50 = vpop.permute.xlu0 %1274 }
 0x693   :  { %v1352_v55 = vpop.permute.xlu0 %1351 }
 0x699   :  { %v2490_v48 = vpop.eup %2489 }
 0x69a   :  { %v1271_v52 = vmul.f32 %v2490_v48, %v2484_v27 }
 0x6f2   :  { %v853_v35 = vpop.f32.mrf.mxu1 }
 0x6f3   :  { %2358 = vmatmul.mubr.msk.f32.vlgmr.msra.gmra.mxu1 %vm196_vm2, %v853_v35 }
 0x6f4   :  { %2368 = vmatpush3.msra.mxu1 %v1027_v36  ;;  %v2354_v37 = vpop.f32.mrf.mxu1  ;;  %2371 = vmatprep.mubr.msk.f32.mxu1 %vm2618_vm1, %v2617_v6 }
 0x6f5   :  { %2369 = vmatprep.subr.mxu1 %v2617_v6 }
 0x6f6   :  { %2370 = vmatpush3.msra.mxu1 %v1025_v23 }
 0x6f7   :  { %2372 = vmatmul.mubr.msk.f32.vlgmr.msra.gmra.mxu1 %vm276_vm3, %v1023_v38  ;;  %2374 = vmatprep.subr.mxu1 %v2617_v6 }
 0x6f8   :  { %2376 = vmatprep.mubr.msk.f32.mxu1 %vm2618_vm1, %v2617_v6  ;;  %2375 = vmatpush3.msra.mxu1 %v2865_v39 }
 0x6f9   :  { %2386 = vmatprep.subr.mxu1 %v2617_v6 }
 0x7b3   :  { %v926_v43 = vpop.f32.mrf.mxu1 }
 0x7b4   :  { %v930_v44 = vadd.f32 %v926_v43, %v682_v42 }
 0x7b5   :  { %v2359_v45 = vpop.f32.mrf.mxu1 }
 0x7b7   :  { %v1099_v49 = vpop.f32.mrf.mxu1 }
 0x7b8   :  { %2377 = vmatmul.mubr.msk.f32.vlgmr.msra.gmra.mxu1 %vm196_vm2, %v1099_v49 }
 0x7b9   :  { %2387 = vmatpush3.msra.mxu1 %v1275_v50  ;;  %v2373_v51 = vpop.f32.mrf.mxu1  ;;  %2390 = vmatprep.mubr.msk.f32.mxu1 %vm2618_vm1, %v2617_v6 }
 0x7ba   :  { %2388 = vmatprep.subr.mxu1 %v2617_v6 }
 0x7bb   :  { %2389 = vmatpush3.msra.mxu1 %v1273_v46 }
 0x7bc   :  { %2393 = vmatprep.subr.mxu1 %v2617_v6  ;;  %2391 = vmatmul.mubr.msk.f32.vlgmr.msra.gmra.mxu1 %vm276_vm3, %v1271_v52 }
 0x7bd   :  { %2394 = vmatpush3.xpose.msk.msra.mxu1 %vm196_vm2, %v1354_v53  ;;  %2397 = vmatprep.mubr.msk.f32.mxu1 %vm2618_vm1, %v2617_v6 }
 0x7be   :  { %2395 = vmatprep.subr.mxu1 %v2617_v6 }
 0x7c1   :  { %2396 = vmatpush3.xpose.msk.msra.mxu1 %vm196_vm2, %v1352_v55 }
 0x7c2   :  { %2412 = vmatprep.subr.mxu1 %v2617_v6 }
 0x7c4   :  { %2398 = vmatmul.mubr.msk.f32.vlgmr.msra.gmra.mxu1 %vm196_vm2, %v2725_v17 }
 0x7c5   :  { %2413 = vmatpush3.msra.mxu1 %v2771_v47  ;;  %2414 = vmatprep.mubr.msk.f32.mxu1 %vm2618_vm1, %v2617_v6 }
 0x7c6   :  { %2424 = vmatprep.subr.mxu1 %v2617_v6 }
 0x878   :  { %v1172_v60 = vpop.f32.mrf.mxu1 }
 0x879   :  { %v1176_v61 = vadd.f32 %v1172_v60, %v930_v44 }
 0x87a   :  { %v2378_v62 = vpop.f32.mrf.mxu1 }
 0x87b   :  { %v1183_v63 = vadd.f32 %v2892_v56, %v1176_v61 }
 0x87c   :  { %v1347_v0 = vpop.f32.mrf.mxu1 }
 0x87d   :  { %1184 = vst.msk [vmem:[#allocation10] sm:$0xff] %vm92_vm0, %v1183_v63  ;;  %2415 = vmatmul.mubr.msk.f32.vlgmr.msra.gmra.mxu1 %vm196_vm2, %v1347_v0 }
 0x87e   :  { %v2392_v17 = vpop.f32.mrf.mxu1  ;;  %2428 = vmatprep.mubr.msk.f32.mxu1 %vm2618_vm1, %v2617_v6 }
 0x884   :  { %v1425_v47 = vpop.f32.mrf.mxu1 }
 0x885   :  { %v1429_v1 = vsel %vm276_vm3, %v1425_v47, -inf }
 0x886   :  { %1430 = vmax.xlane.f32.xlu1 %v1429_v1  ;;  %v2399_v2 = vpop.f32.mrf.mxu1 }
 0x897   :  { %1440 = vrot.lane.b32.xlu1 %v2813_v59, %s2621_s18 }
 0x89b   :  { %1667 = vrot.lane.b32.xlu1 %v2802_v58, %s2622_s19 }
 0x89f   :  { %1909 = vrot.lane.b32.xlu1 %v2802_v58, %s2623_s20 }
 0x90f   :  { %v1431_v3 = vpop.xlane.xlu1 %1430 }
 0x910   :  { %v1432_v4 = vsub.f32 %v1425_v47, %v1431_v3 }
 0x912   :  { %v1433_v5 = vmul.f32 1.442695, %v1432_v4 }
 0x913   :  { %v1441_v15 = vpop.permute.xlu1 %1440 }
 0x914   :  { %2491 = vpow2.f32 %v1433_v5 }
 0x917   :  { %v1668_v19 = vpop.permute.xlu1 %1667 }
 0x921   :  { %v2492_v8 = vpop.eup %2491 }
 0x922   :  { %v1435_v7 = vsel %vm276_vm3, %v2492_v8, 0.0 }
 0x923   :  { %1436 = vadd.xlane.f32.xlu0 %v1435_v7 }
 0x939   :  { %1442 = vrot.lane.b32.xlu0 %v2802_v58, %s2621_s18 }
 0x93d   :  { %1665 = vrot.lane.b32.xlu0 %v2813_v59, %s2622_s19  ;;  %v2911_v9 = vpop.f32.mrf.mxu1 }
 0x93f   :  { %v2416_v10 = vpop.f32.mrf.mxu1 }
 0x941   :  { %1907 = vrot.lane.b32.xlu0 %v2813_v59, %s2623_s20 }
 0x9ac   :  { %v1437_v11 = vpop.xlane.xlu0 %1436 }
 0x9ad   :  { %2493 = vrcp.f32 %v1437_v11 }
 0x9b0   :  { %v1443_v13 = vpop.permute.xlu0 %1442 }
 0x9b1   :  { %2401 = vmatpush3.msra.mxu0 %v1443_v13 }
 0x9b2   :  { %2402 = vmatprep.subr.mxu0 %v2617_v6 }
 0x9b3   :  { %2403 = vmatpush3.msra.mxu0 %v1441_v15 }
 0x9b4   :  { %2407 = vmatprep.subr.mxu0 %v2617_v6  ;;  %v1666_v21 = vpop.permute.xlu0 %1665 }
 0x9b8   :  { %v1908_v22 = vpop.permute.xlu0 %1907 }
 0x9ba   :  { %v2494_v16 = vpop.eup %2493 }
 0x9bb   :  { %v1439_v14 = vmul.f32 %v2494_v16, %v2492_v8 }
 0x9bd   :  { %2405 = vmatmul.mubr.msk.f32.vlgmr.msra.gmra.mxu0 %vm276_vm3, %v1439_v14 }
 0x9be   :  { %2408 = vmatpush3.msra.mxu0 %v2765_v41  ;;  %2409 = vmatprep.mubr.msk.f32.mxu0 %vm2618_vm1, %v2617_v6  ;;  %v1910_v41 = vpop.permute.xlu1 %1909 }
 0x9bf   :  { %2417 = vmatprep.subr.mxu0 %v2617_v6 }
 0xa7d   :  { %v1515_v18 = vpop.f32.mrf.mxu0 }
 0xa7e   :  { %2410 = vmatmul.mubr.msk.f32.vlgmr.msra.gmra.mxu0 %vm196_vm2, %v1515_v18 }
 0xa7f   :  { %2418 = vmatpush3.xpose.msk.msra.mxu0 %vm196_vm2, %v1668_v19  ;;  %v2406_v20 = vpop.f32.mrf.mxu0  ;;  %2421 = vmatprep.mubr.msk.f32.mxu0 %vm2618_vm1, %v2617_v6 }
 0xa80   :  { %2419 = vmatprep.subr.mxu0 %v2617_v6 }
 0xa83   :  { %2420 = vmatpush3.xpose.msk.msra.mxu0 %vm196_vm2, %v1666_v21 }
 0xa84   :  { %2436 = vmatprep.subr.mxu0 %v2617_v6 }
 0xa86   :  { %2422 = vmatmul.mubr.msk.f32.vlgmr.msra.gmra.mxu0 %vm196_vm2, %v2787_v54 }
 0xa87   :  { %2437 = vmatpush3.xpose.msk.msra.mxu0 %vm196_vm2, %v1910_v41  ;;  %2440 = vmatprep.mubr.msk.f32.mxu0 %vm2618_vm1, %v2617_v6 }
 0xa88   :  { %2438 = vmatprep.subr.mxu0 %v2617_v6 }
 0xa8b   :  { %2439 = vmatpush3.xpose.msk.msra.mxu0 %vm196_vm2, %v1908_v22 }
 0xa8e   :  { %2441 = vmatmul.mubr.msk.f32.vlgmr.msra.gmra.mxu0 %vm196_vm2, %v2797_v57 }
 0xb3e   :  { %v1588_v23 = vpop.f32.mrf.mxu0 }
 0xb3f   :  { %v1662_v51 = vadd.f32 %v2911_v9, %v1588_v23 }
 0xb40   :  { %v2411_v24 = vpop.f32.mrf.mxu0 }
 0xb46   :  { %v1739_v25 = vpop.f32.mrf.mxu0 }
 0xb47   :  { %v1743_v26 = vsel %vm276_vm3, %v1739_v25, -inf }
 0xb48   :  { %1744 = vmax.xlane.f32.xlu1 %v1743_v26  ;;  %v2423_v54 = vpop.f32.mrf.mxu0 }
 0xb4e   :  { %v1981_v27 = vpop.f32.mrf.mxu0 }
 0xb4f   :  { %v1985_v29 = vsel %vm276_vm3, %v1981_v27, -inf }
 0xb50   :  { %v2442_v28 = vpop.f32.mrf.mxu0 }
 0xb59   :  { %1754 = vrot.lane.b32.xlu1 %v2813_v59, %s2624_s21 }
 0xb7d   :  { %1986 = vmax.xlane.f32.xlu1 %v1985_v29 }
 0xb8e   :  { %1996 = vrot.lane.b32.xlu1 %v2813_v59, %s2625_s22 }
 0xbd1   :  { %v1745_v30 = vpop.xlane.xlu1 %1744 }
 0xbd2   :  { %v1746_v57 = vsub.f32 %v1739_v25, %v1745_v30 }
 0xbd4   :  { %v1747_v12 = vmul.f32 1.442695, %v1746_v57 }
 0xbd5   :  { %v1755_v34 = vpop.permute.xlu1 %1754 }
 0xbd6   :  { %2495 = vpow2.f32 %v1747_v12 }
 0xbe3   :  { %v2496_v31 = vpop.eup %2495 }
 0xbe4   :  { %v1749_v33 = vsel %vm276_vm3, %v2496_v31, 0.0 }
 0xbe5   :  { %1750 = vadd.xlane.f32.xlu0 %v1749_v33 }
 0xbfb   :  { %1756 = vrot.lane.b32.xlu0 %v2802_v58, %s2624_s21 }
 0xc06   :  { %v1987_v35 = vpop.xlane.xlu1 %1986 }
 0xc07   :  { %v1988_v36 = vsub.f32 %v1981_v27, %v1987_v35 }
 0xc09   :  { %v1989_v37 = vmul.f32 1.442695, %v1988_v36 }
 0xc0a   :  { %v1997_v50 = vpop.permute.xlu1 %1996 }
 0xc0b   :  { %2497 = vpow2.f32 %v1989_v37 }
 0xc18   :  { %v2498_v38 = vpop.eup %2497 }
 0xc19   :  { %v1991_v40 = vsel %vm276_vm3, %v2498_v38, 0.0 }
 0xc1a   :  { %1992 = vadd.xlane.f32.xlu0 %v1991_v40 }
 0xc30   :  { %1998 = vrot.lane.b32.xlu0 %v2802_v58, %s2625_s22 }
 0xc6e   :  { %v1751_v59 = vpop.xlane.xlu0 %1750 }
 0xc6f   :  { %2499 = vrcp.f32 %v1751_v59 }
 0xc72   :  { %v1757_v42 = vpop.permute.xlu0 %1756 }
 0xc73   :  { %2425 = vmatpush3.msra.mxu1 %v1757_v42 }
 0xc74   :  { %2426 = vmatprep.subr.mxu1 %v2617_v6 }
 0xc75   :  { %2427 = vmatpush3.msra.mxu1 %v1755_v34 }
 0xc76   :  { %2431 = vmatprep.subr.mxu1 %v2617_v6 }
 0xc7c   :  { %v2500_v43 = vpop.eup %2499 }
 0xc7d   :  { %v1753_v44 = vmul.f32 %v2500_v43, %v2496_v31 }
 0xc7f   :  { %2429 = vmatmul.mubr.msk.f32.vlgmr.msra.gmra.mxu1 %vm276_vm3, %v1753_v44 }
 0xc80   :  { %2432 = vmatpush3.msra.mxu1 %v2850_v32  ;;  %2433 = vmatprep.mubr.msk.f32.mxu1 %vm2618_vm1, %v2617_v6 }
 0xc81   :  { %2443 = vmatprep.subr.mxu1 %v2617_v6 }
 0xca3   :  { %v1993_v58 = vpop.xlane.xlu0 %1992 }
 0xca4   :  { %2501 = vrcp.f32 %v1993_v58 }
 0xca7   :  { %v1999_v48 = vpop.permute.xlu0 %1998 }
 0xcb1   :  { %v2502_v45 = vpop.eup %2501 }
 0xcb2   :  { %v1995_v32 = vmul.f32 %v2502_v45, %v2498_v38 }
 0xd3f   :  { %v1829_v46 = vpop.f32.mrf.mxu1 }
 0xd40   :  { %2434 = vmatmul.mubr.msk.f32.vlgmr.msra.gmra.mxu1 %vm196_vm2, %v1829_v46 }
 0xd41   :  { %2444 = vmatpush3.msra.mxu1 %v1999_v48  ;;  %v2430_v49 = vpop.f32.mrf.mxu1  ;;  %2447 = vmatprep.mubr.msk.f32.mxu1 %vm2618_vm1, %v2617_v6 }
 0xd42   :  { %2445 = vmatprep.subr.mxu1 %v2617_v6 }
 0xd43   :  { %2446 = vmatpush3.msra.mxu1 %v1997_v50 }
 0xd44   :  { %2448 = vmatmul.mubr.msk.f32.vlgmr.msra.gmra.mxu1 %vm276_vm3, %v1995_v32  ;;  %2450 = vmatprep.subr.mxu1 %v2617_v6 }
 0xd45   :  { %2451 = vmatpush3.msra.mxu1 %v2865_v39  ;;  %2452 = vmatprep.mubr.msk.f32.mxu1 %vm2618_vm1, %v2617_v6 }
 0xe00   :  { %v1902_v52 = vpop.f32.mrf.mxu1 }
 0xe01   :  { %v1906_v53 = vadd.f32 %v1902_v52, %v1662_v51 }
 0xe02   :  { %v2435_v55 = vpop.f32.mrf.mxu1 }
 0xe04   :  { %v2071_v60 = vpop.f32.mrf.mxu1 }
 0xe05   :  { %2453 = vmatmul.mubr.msk.f32.vlgmr.msra.gmra.mxu1 %vm196_vm2, %v2071_v60 }
 0xe06   :  { %v2449_v61 = vpop.f32.mrf.mxu1 }
 0xec5   :  { %v2144_v62 = vpop.f32.mrf.mxu1 }
 0xec6   :  { %v2148_v63 = vadd.f32 %v2144_v62, %v1906_v53 }
 0xec7   :  { %v2454_v0 = vpop.f32.mrf.mxu1 }
 0xec8   :  { %v2149_v17 = vadd.f32 %v2892_v56, %v2148_v63 }
 0xeca   :  { %2151 = vst.msk [vmem:[#allocation10 + $0x8] sm:$0xff] %vm92_vm0, %v2149_v17 }
 0xecb   :  { %2594 = shalt.err (!%p2591_p10)
}
 0xecc   :  { %2163 = dma.vmem_to_hbm [thread:$0]  %s2158_s25, 256, %s2982_s6, [#allocation4], %s2613_s29, %s2613_s29, %s2614_s30  }
 0xecd   :  { %2609 = dma.done.wait [#allocation4], 256  }
 0xece   :  { %2610 = vsyncadd [#allocation4], 4294967040 }
 0xecf   :  { %2167 = vsyncpa [#allocation3], 1 }
 0xed0   :  { %2168 = vsyncpa [#allocation6], 1 }
 0xed1   :  { %2169 = vsyncpa [#allocation9], 1 }
 0xed2   :  { %2170 = vsyncpa [#allocation4], 1 }

</bundles_post_ra>
